<compile_context>
chip_gen: v7x
topology: tpu7x:2x2x1
jax: 0.10.0
libtpu: 0.0.40
codegen_flags: <defaults>
</compile_context>

<pallas_src>
import functools

import jax
import jax.numpy as jnp
from jax.experimental import pallas as pl
from jax.experimental.pallas import tpu as pltpu

_LANE = 128
_SUBLANE = 8
_SQRT_HALF = 0.7071067811865476


def _round_up(n, m):
    return ((n + m - 1) // m) * m


def _mlp_fused_kernel(x_ref, *refs, padded_dims, real_dims, add_bias,
                      apply_layernorm, eps, approx_gelu):
    """Whole-MLP fused kernel over one (bm, features) activation tile.

    refs layout: w_0..w_{L-1} [, b_0..b_{L-1}], o_ref
      w_l: (d_in_pad, d_out_pad)  pre-transposed (K, N) layout, zero-padded
      b_l: (1, d_out_pad)         zero-padded
    Padded lanes of weights/biases are zero, so activations remain exactly zero
    in padded lanes through the whole layer stack.
    """
    n_layers = len(real_dims) - 1
    w_refs = refs[:n_layers]
    if add_bias:
        b_refs = refs[n_layers:2 * n_layers]
        o_ref = refs[2 * n_layers]
    else:
        b_refs = (None,) * n_layers
        o_ref = refs[n_layers]

    h = x_ref[...]                                   # (bm, d0_pad), input dtype
    for l in range(n_layers):
        w = w_refs[l][...]                           # (d_in_pad, d_out_pad)
        lhs = h if h.dtype == w.dtype else h.astype(w.dtype)
        h = jnp.dot(lhs, w, preferred_element_type=jnp.float32)
        if add_bias:
            h = h + b_refs[l][...].astype(jnp.float32)

        if l != n_layers - 1:
            if apply_layernorm:
                # nn.LayerNorm over the last dim, elementwise_affine=False.
                # Padded lanes of h are exactly zero, so the sum over the padded
                # width equals the sum over the real width; divide by the real dim.
                d_real = real_dims[l + 1]
                d_pad = padded_dims[l + 1]
                inv_n = jnp.float32(1.0 / d_real)
                mean = jnp.sum(h, axis=-1, keepdims=True) * inv_n
                centered = h - mean
                if d_pad != d_real:
                    lane = jax.lax.broadcasted_iota(jnp.int32, (1, d_pad), 1)
                    centered = jnp.where(lane < d_real, centered, 0.0)
                var = jnp.sum(centered * centered, axis=-1, keepdims=True) * inv_n
                h = centered * jax.lax.rsqrt(var + jnp.float32(eps))
            if approx_gelu:
                # tanh approximation (EUP path); numerics differ slightly from torch default.
                c = jnp.float32(0.7978845608028654)  # sqrt(2/pi)
                h = 0.5 * h * (1.0 + jnp.tanh(c * (h + 0.044715 * h * h * h)))
            else:
                # Exact GELU (erf form), matching torch.nn.GELU() default.
                h = 0.5 * h * (1.0 + jax.lax.erf(h * jnp.float32(_SQRT_HALF)))

    o_ref[...] = h.astype(o_ref.dtype)


def mlp_forward(x, weights, biases=None, *, add_bias=True, apply_layernorm=False,
                eps=1e-5, bm=256, approx_gelu=False, interpret=False):
    """Full MLP forward as a single fused Pallas kernel (grid over batch tiles)."""
    B, d0 = x.shape
    n_layers = len(weights)
    real_dims = (int(d0),) + tuple(int(w.shape[0]) for w in weights)
    for l, w in enumerate(weights):
        assert w.shape == (real_dims[l + 1], real_dims[l]), "PyTorch Linear layout (d_out, d_in)"

    padded_dims = tuple(_round_up(d, _LANE) for d in real_dims)

    # ---- batch tiling (any batch size; padded with zero rows) ----------------
    b_round = _round_up(B, _SUBLANE)
    bm_eff = min(_round_up(bm, _SUBLANE), b_round)
    # Prefer >=2 grid programs so the "parallel" axis can shard across v7x's 2 TCs.
    if b_round // bm_eff < 2 and bm_eff >= 2 * _SUBLANE:
        bm_eff = _round_up(bm_eff // 2, _SUBLANE)
    b_pad = _round_up(B, bm_eff)
    grid = (b_pad // bm_eff,)

    # ---- one-time layout plumbing: pad activations, transpose+pad params -----
    x_p = jnp.zeros((b_pad, padded_dims[0]), x.dtype).at[:B, :d0].set(x)
    w_ps, b_ps = [], []
    for l in range(n_layers):
        d_in, d_out = real_dims[l], real_dims[l + 1]
        w_t = jnp.transpose(weights[l])                      # (d_in, d_out)
        w_p = jnp.zeros((padded_dims[l], padded_dims[l + 1]), w_t.dtype)
        w_ps.append(w_p.at[:d_in, :d_out].set(w_t))
        if add_bias:
            b = biases[l]
            b_p = jnp.zeros((1, padded_dims[l + 1]), b.dtype)
            b_ps.append(b_p.at[0, :d_out].set(b))

    # ---- VMEM sanity: this kernel keeps every weight resident ---------------
    param_bytes = sum(int(a.size) * a.dtype.itemsize for a in w_ps + b_ps)
    act_bytes = bm_eff * (padded_dims[0] + padded_dims[-1]) * 4
    if 2 * (param_bytes + act_bytes) > 24 * 1024 * 1024:
        # TODO(synk): K-tile weights + accumulator scratch for large dims (v7x 64 MiB VMEM).
        raise NotImplementedError("MLP too large for the weight-resident fused kernel")

    kernel = functools.partial(
        _mlp_fused_kernel,
        padded_dims=padded_dims, real_dims=real_dims, add_bias=add_bias,
        apply_layernorm=apply_layernorm, eps=eps, approx_gelu=approx_gelu)

    in_specs = [pl.BlockSpec((bm_eff, padded_dims[0]), lambda i: (i, 0))]
    in_specs += [pl.BlockSpec((padded_dims[l], padded_dims[l + 1]), lambda i: (0, 0))
                 for l in range(n_layers)]
    if add_bias:
        in_specs += [pl.BlockSpec((1, padded_dims[l + 1]), lambda i: (0, 0))
                     for l in range(n_layers)]

    out = pl.pallas_call(
        kernel,
        out_shape=jax.ShapeDtypeStruct((b_pad, padded_dims[-1]), x.dtype),
        grid=grid,
        in_specs=in_specs,
        out_specs=pl.BlockSpec((bm_eff, padded_dims[-1]), lambda i: (i, 0)),
        compiler_params=pltpu.CompilerParams(dimension_semantics=("parallel",)),
        interpret=interpret,
    )(x_p, *w_ps, *b_ps)

    return out[:B, :real_dims[-1]]


def mlp_reference(x, weights, biases=None, *, add_bias=True, apply_layernorm=False, eps=1e-5):
    """Pure-JAX reference for correctness checking."""
    h = x.astype(jnp.float32)
    n_layers = len(weights)
    for i in range(n_layers):
        w = weights[i].astype(jnp.float32)
        h = h @ w.T
        if add_bias:
            h = h + biases[i].astype(jnp.float32)
        if i < n_layers - 1:
            if apply_layernorm:
                mean = jnp.mean(h, axis=-1, keepdims=True)
                var = jnp.mean((h - mean) ** 2, axis=-1, keepdims=True)
                h = (h - mean) * jax.lax.rsqrt(var + eps)
            h = 0.5 * h * (1.0 + jax.lax.erf(h / jnp.sqrt(2.0)))
    return h.astype(x.dtype)


if __name__ == "__main__":
    # MLP(dims=[32, 64, 64, 16], act='gelu')
    dims = [32, 64, 64, 16]
    n_layers = len(dims) - 1

    key = jax.random.PRNGKey(0)
    keys = jax.random.split(key, 2 * n_layers + 1)

    weights, biases = [], []
    for i in range(1, len(dims)):
        d_in, d_out = dims[i - 1], dims[i]
        kw, kb = keys[2 * (i - 1)], keys[2 * (i - 1) + 1]
        # Deterministic synthetic init (PyTorch Linear weight layout: (d_out, d_in)).
        weights.append(jax.random.normal(kw, (d_out, d_in), jnp.float32) * 0.1)
        biases.append(jax.random.normal(kb, (d_out,), jnp.float32) * 0.1)

    configs = [
        dict(batch=8, add_bias=True, apply_layernorm=False),   # module defaults
        dict(batch=10, add_bias=True, apply_layernorm=True),   # batch padding + masked LN path
        dict(batch=8, add_bias=False, apply_layernorm=False),  # bias-free path
    ]
    for cfg in configs:
        xk = jax.random.fold_in(keys[-1], 2 * cfg["batch"] + int(cfg["add_bias"]))
        x = jax.random.normal(xk, (cfg["batch"], dims[0]), jnp.float32)
        bs = biases if cfg["add_bias"] else None

        out = mlp_forward(x, weights, bs, add_bias=cfg["add_bias"],
                          apply_layernorm=cfg["apply_layernorm"])
        out = jax.block_until_ready(out)

        ref = mlp_reference(x, weights, bs, add_bias=cfg["add_bias"],
                            apply_layernorm=cfg["apply_layernorm"])
        assert out.shape == (cfg["batch"], dims[-1])
        assert jnp.allclose(out, ref, atol=2e-5, rtol=2e-5), f"Pallas mismatch for {cfg}"

    print("KERNEL_OK")
</pallas_src>

<mosaic_0001>
module attributes {stable_mosaic.version = 11 : i64} {
  func.func @_mlp_fused_kernel(%arg0: i32, %arg1: memref<8x128xf32, #tpu.memory_space<vmem>>, %arg2: memref<128x128xf32, #tpu.memory_space<vmem>>, %arg3: memref<128x128xf32, #tpu.memory_space<vmem>>, %arg4: memref<128x128xf32, #tpu.memory_space<vmem>>, %arg5: memref<1x128xf32, #tpu.memory_space<vmem>>, %arg6: memref<1x128xf32, #tpu.memory_space<vmem>>, %arg7: memref<1x128xf32, #tpu.memory_space<vmem>>, %arg8: memref<8x128xf32, #tpu.memory_space<vmem>>) attributes {dimension_semantics = [#tpu.dimension_semantics<parallel>], iteration_bounds = array<i64: 1>, scalar_prefetch = 0 : i64, scratch_operands = 0 : i64, tpu.core_type = #tpu.core_type<tc>, window_params = [{transform_indices = @transform_0, window_bounds = array<i64: 8, 128>}, {pipeline_mode = #tpu.pipeline_mode<synchronous>, transform_indices = @transform_1, window_bounds = array<i64: 128, 128>}, {pipeline_mode = #tpu.pipeline_mode<synchronous>, transform_indices = @transform_2, window_bounds = array<i64: 128, 128>}, {pipeline_mode = #tpu.pipeline_mode<synchronous>, transform_indices = @transform_3, window_bounds = array<i64: 128, 128>}, {pipeline_mode = #tpu.pipeline_mode<synchronous>, transform_indices = @transform_4, window_bounds = array<i64: 1, 128>}, {pipeline_mode = #tpu.pipeline_mode<synchronous>, transform_indices = @transform_5, window_bounds = array<i64: 1, 128>}, {pipeline_mode = #tpu.pipeline_mode<synchronous>, transform_indices = @transform_6, window_bounds = array<i64: 1, 128>}, {transform_indices = @transform_7, window_bounds = array<i64: 8, 128>}]} {
    %c0 = arith.constant 0 : index
    %c0_0 = arith.constant 0 : index
    %0 = vector.load %arg1[%c0, %c0_0] : memref<8x128xf32, #tpu.memory_space<vmem>>, vector<8x128xf32>
    %c0_1 = arith.constant 0 : index
    %c0_2 = arith.constant 0 : index
    %1 = vector.load %arg2[%c0_1, %c0_2] : memref<128x128xf32, #tpu.memory_space<vmem>>, vector<128x128xf32>
    %cst = arith.constant dense<0.000000e+00> : vector<8x128xf32>
    %2 = tpu.matmul %0, %1, %cst {dimension_numbers = #tpu.dot_dimension_numbers<[1], [0], [0], [1], [0, 0, 1, 1], [], []>} : vector<8x128xf32>, vector<128x128xf32>, vector<8x128xf32> -> vector<8x128xf32>
    %c0_3 = arith.constant 0 : index
    %c0_4 = arith.constant 0 : index
    %3 = vector.load %arg5[%c0_3, %c0_4] : memref<1x128xf32, #tpu.memory_space<vmem>>, vector<1x128xf32>
    %4 = vector.broadcast %3 : vector<1x128xf32> to vector<8x128xf32>
    %5 = arith.addf %2, %4 : vector<8x128xf32>
    %cst_5 = arith.constant 5.000000e-01 : f32
    %6 = vector.broadcast %cst_5 : f32 to vector<8x128xf32>
    %7 = arith.mulf %6, %5 : vector<8x128xf32>
    %cst_6 = arith.constant 0.707106769 : f32
    %8 = vector.broadcast %cst_6 : f32 to vector<8x128xf32>
    %9 = arith.mulf %5, %8 : vector<8x128xf32>
    %10 = math.erf %9 : vector<8x128xf32>
    %cst_7 = arith.constant 1.000000e+00 : f32
    %11 = vector.broadcast %cst_7 : f32 to vector<8x128xf32>
    %12 = arith.addf %11, %10 : vector<8x128xf32>
    %13 = arith.mulf %7, %12 : vector<8x128xf32>
    %c0_8 = arith.constant 0 : index
    %c0_9 = arith.constant 0 : index
    %14 = vector.load %arg3[%c0_8, %c0_9] : memref<128x128xf32, #tpu.memory_space<vmem>>, vector<128x128xf32>
    %cst_10 = arith.constant dense<0.000000e+00> : vector<8x128xf32>
    %15 = tpu.matmul %13, %14, %cst_10 {dimension_numbers = #tpu.dot_dimension_numbers<[1], [0], [0], [1], [0, 0, 1, 1], [], []>} : vector<8x128xf32>, vector<128x128xf32>, vector<8x128xf32> -> vector<8x128xf32>
    %c0_11 = arith.constant 0 : index
    %c0_12 = arith.constant 0 : index
    %16 = vector.load %arg6[%c0_11, %c0_12] : memref<1x128xf32, #tpu.memory_space<vmem>>, vector<1x128xf32>
    %17 = vector.broadcast %16 : vector<1x128xf32> to vector<8x128xf32>
    %18 = arith.addf %15, %17 : vector<8x128xf32>
    %cst_13 = arith.constant 5.000000e-01 : f32
    %19 = vector.broadcast %cst_13 : f32 to vector<8x128xf32>
    %20 = arith.mulf %19, %18 : vector<8x128xf32>
    %cst_14 = arith.constant 0.707106769 : f32
    %21 = vector.broadcast %cst_14 : f32 to vector<8x128xf32>
    %22 = arith.mulf %18, %21 : vector<8x128xf32>
    %23 = math.erf %22 : vector<8x128xf32>
    %cst_15 = arith.constant 1.000000e+00 : f32
    %24 = vector.broadcast %cst_15 : f32 to vector<8x128xf32>
    %25 = arith.addf %24, %23 : vector<8x128xf32>
    %26 = arith.mulf %20, %25 : vector<8x128xf32>
    %c0_16 = arith.constant 0 : index
    %c0_17 = arith.constant 0 : index
    %27 = vector.load %arg4[%c0_16, %c0_17] : memref<128x128xf32, #tpu.memory_space<vmem>>, vector<128x128xf32>
    %cst_18 = arith.constant dense<0.000000e+00> : vector<8x128xf32>
    %28 = tpu.matmul %26, %27, %cst_18 {dimension_numbers = #tpu.dot_dimension_numbers<[1], [0], [0], [1], [0, 0, 1, 1], [], []>} : vector<8x128xf32>, vector<128x128xf32>, vector<8x128xf32> -> vector<8x128xf32>
    %c0_19 = arith.constant 0 : index
    %c0_20 = arith.constant 0 : index
    %29 = vector.load %arg7[%c0_19, %c0_20] : memref<1x128xf32, #tpu.memory_space<vmem>>, vector<1x128xf32>
    %30 = vector.broadcast %29 : vector<1x128xf32> to vector<8x128xf32>
    %31 = arith.addf %28, %30 : vector<8x128xf32>
    %c0_21 = arith.constant 0 : index
    %c0_22 = arith.constant 0 : index
    %32 = vector.load %arg8[%c0_21, %c0_22] : memref<8x128xf32, #tpu.memory_space<vmem>>, vector<8x128xf32>
    tpu.vector_store %arg8[%c0_21, %c0_22], %31 {strides = array<i32>} : memref<8x128xf32, #tpu.memory_space<vmem>>, vector<8x128xf32>,
    return
  }
  func.func @transform_0(%arg0: i32) -> (i32, i32) {
    %c0_i32 = arith.constant 0 : i32
    %c0_i32_0 = arith.constant 0 : i32
    return %arg0, %c0_i32 : i32, i32
  }
  func.func @transform_1(%arg0: i32) -> (i32, i32) {
    %c0_i32 = arith.constant 0 : i32
    %c0_i32_0 = arith.constant 0 : i32
    %c0_i32_1 = arith.constant 0 : i32
    return %c0_i32, %c0_i32_0 : i32, i32
  }
  func.func @transform_2(%arg0: i32) -> (i32, i32) {
    %c0_i32 = arith.constant 0 : i32
    %c0_i32_0 = arith.constant 0 : i32
    %c0_i32_1 = arith.constant 0 : i32
    return %c0_i32, %c0_i32_0 : i32, i32
  }
  func.func @transform_3(%arg0: i32) -> (i32, i32) {
    %c0_i32 = arith.constant 0 : i32
    %c0_i32_0 = arith.constant 0 : i32
    %c0_i32_1 = arith.constant 0 : i32
    return %c0_i32, %c0_i32_0 : i32, i32
  }
  func.func @transform_4(%arg0: i32) -> (i32, i32) {
    %c0_i32 = arith.constant 0 : i32
    %c0_i32_0 = arith.constant 0 : i32
    %c0_i32_1 = arith.constant 0 : i32
    return %c0_i32, %c0_i32_0 : i32, i32
  }
  func.func @transform_5(%arg0: i32) -> (i32, i32) {
    %c0_i32 = arith.constant 0 : i32
    %c0_i32_0 = arith.constant 0 : i32
    %c0_i32_1 = arith.constant 0 : i32
    return %c0_i32, %c0_i32_0 : i32, i32
  }
  func.func @transform_6(%arg0: i32) -> (i32, i32) {
    %c0_i32 = arith.constant 0 : i32
    %c0_i32_0 = arith.constant 0 : i32
    %c0_i32_1 = arith.constant 0 : i32
    return %c0_i32, %c0_i32_0 : i32, i32
  }
  func.func @transform_7(%arg0: i32) -> (i32, i32) {
    %c0_i32 = arith.constant 0 : i32
    %c0_i32_0 = arith.constant 0 : i32
    return %arg0, %c0_i32 : i32, i32
  }
}

</mosaic_0001>

<bundles_post_ra>
// kernel: tpu_custom_call.1
= control target key start
LH: loop header
LB: loop body
LE: loop exit
PB: predicated region body
PF: predicated region fallthrough
CT: control target
= control target key end

     0   :  { %12 = vsyncpa [#allocation3], 0  ;;  %s906_s0 = inlined_call_operand.hbm [shape: f32[8,128], index: 0, kind: input, shape index: {}]   ;;  %s907_s1 = inlined_call_operand.hbm [shape: f32[128,128], index: 1, kind: input, shape index: {}]   ;;  %s908_s2 = inlined_call_operand.hbm [shape: f32[128,128], index: 2, kind: input, shape index: {}]   ;;  %s909_s3 = inlined_call_operand.hbm [shape: f32[128,128], index: 3, kind: input, shape index: {}]   ;;  %s910_s4 = inlined_call_operand.vmem [shape: f32[1,128], index: 4, kind: input, shape index: {}]   ;;  %s911_s5 = inlined_call_operand.vmem [shape: f32[1,128], index: 5, kind: input, shape index: {}]   ;;  %s912_s6 = inlined_call_operand.vmem [shape: f32[1,128], index: 6, kind: input, shape index: {}]   ;;  %s913_s7 = inlined_call_operand.hbm [shape: f32[8,128], index: 7, kind: output, shape index: {}]  }
   0x1   :  { %13 = vsyncpa [#allocation6], 0 }
   0x2   :  { %14 = vsyncpa [#allocation9], 0 }
   0x3   :  { %15 = vsyncpa [#allocation4], 0  ;;  %s751_s24 = smov [#allocation5]   ;;  %s633_s28 = scalar_lea.hbm %s907_s1, 2048 }
   0x4   :  { %s31_s25 = sshll.u32 %s751_s24, 4  ;;  %p634_p0 = scmp.ne.s32.totalorder %s907_s1, %s633_s28  ;;  %s32_s25 = int_to_ptr.vmem [resolvable:$true] %s31_s25 }
   0x5   :  { %p637_p1 = scmp.lt.u32.totalorder %s633_s28, %s907_s1 }
   0x7   :  { %p639_p2 = pnand %p637_p1, %p634_p0 }
   0x9   :  { %642 = shalt.err (!%p639_p2)
}
   0xa   :  { %s643_s10 = scalar_lea.vmem %s32_s25, 2048  ;;  %p648_p4 = scmp.lt.s32.totalorder %s32_s25, %s32_s25 }
   0xb   :  { %p644_p3 = scmp.ne.s32.totalorder %s32_s25, %s643_s10  ;;  %p649_p5 = scmp.lt.s32.totalorder %s643_s10, %s643_s10 }
   0xd   :  { %p650_p6 = por %p649_p5, %p648_p4 }
   0xf   :  { %p651_p7 = pnand %p650_p6, %p644_p3 }
  0x11   :  { %654 = shalt.err (!%p651_p7)
}
  0x12   :  { %s752_s11 = smov 128   ;;  %s753_s12 = smov 8  }
  0x13   :  { %37 = dma.hbm_to_vmem [thread:$0]  %s907_s1, 2048, %s32_s25, [#allocation6], %s752_s11, %s752_s11, %s753_s12  }
  0x14   :  { %s754_s15 = smov [#allocation2]   ;;  %s755_s17 = smov [#allocation7]  }
  0x15   :  { %s22_s16 = sshll.u32 %s754_s15, 4  ;;  %s43_s18 = sshll.u32 %s755_s17, 4  ;;  %s23_s16 = int_to_ptr.vmem [resolvable:$true] %s22_s16  ;;  %s44_s18 = int_to_ptr.vmem [resolvable:$true] %s43_s18 }
  0x16   :  { %s655_s21 = scalar_lea.hbm %s906_s0, 128 }
  0x17   :  { %p656_p8 = scmp.ne.s32.totalorder %s906_s0, %s655_s21  ;;  %p659_p9 = scmp.lt.u32.totalorder %s655_s21, %s906_s0 }
  0x19   :  { %p661_p10 = pnand %p659_p9, %p656_p8 }
  0x1b   :  { %664 = shalt.err (!%p661_p10)
}
  0x1c   :  { %s665_s1 = scalar_lea.vmem %s23_s16, 128  ;;  %p670_p12 = scmp.lt.s32.totalorder %s23_s16, %s23_s16 }
  0x1d   :  { %p666_p11 = scmp.ne.s32.totalorder %s23_s16, %s665_s1  ;;  %p671_p13 = scmp.lt.s32.totalorder %s665_s1, %s665_s1 }
  0x1f   :  { %p672_p0 = por %p671_p13, %p670_p12 }
  0x21   :  { %p673_p1 = pnand %p672_p0, %p666_p11 }
  0x23   :  { %676 = shalt.err (!%p673_p1)
}
  0x24   :  { %25 = dma.hbm_to_vmem [thread:$0]  %s906_s0, 128, %s23_s16, [#allocation3]  }
  0x25   :  { %s677_s30 = scalar_lea.hbm %s908_s2, 2048 }
  0x26   :  { %p678_p2 = scmp.ne.s32.totalorder %s908_s2, %s677_s30  ;;  %p681_p3 = scmp.lt.u32.totalorder %s677_s30, %s908_s2 }
  0x28   :  { %p683_p4 = pnand %p681_p3, %p678_p2 }
  0x2a   :  { %686 = shalt.err (!%p683_p4)
}
  0x2b   :  { %s687_s14 = scalar_lea.vmem %s44_s18, 2048  ;;  %p692_p6 = scmp.lt.s32.totalorder %s44_s18, %s44_s18 }
  0x2c   :  { %p688_p5 = scmp.ne.s32.totalorder %s44_s18, %s687_s14  ;;  %p693_p7 = scmp.lt.s32.totalorder %s687_s14, %s687_s14 }
  0x2e   :  { %p694_p8 = por %p693_p7, %p692_p6 }
  0x30   :  { %p695_p9 = pnand %p694_p8, %p688_p5 }
  0x32   :  { %698 = shalt.err (!%p695_p9)
}
  0x33   :  { %49 = dma.hbm_to_vmem [thread:$0]  %s908_s2, 2048, %s44_s18, [#allocation6], %s752_s11, %s752_s11, %s753_s12  }
  0x34   :  { %s756_s16 = smov [#allocation8]   ;;  %s699_s21 = scalar_lea.hbm %s909_s3, 2048 }
  0x35   :  { %s55_s17 = sshll.u32 %s756_s16, 4  ;;  %p700_p10 = scmp.ne.s32.totalorder %s909_s3, %s699_s21  ;;  %s56_s17 = int_to_ptr.vmem [resolvable:$true] %s55_s17 }
  0x36   :  { %p703_p11 = scmp.lt.u32.totalorder %s699_s21, %s909_s3 }
  0x38   :  { %p705_p12 = pnand %p703_p11, %p700_p10 }
  0x3a   :  { %708 = shalt.err (!%p705_p12)
}
  0x3b   :  { %s709_s1 = scalar_lea.vmem %s56_s17, 2048  ;;  %p714_p0 = scmp.lt.s32.totalorder %s56_s17, %s56_s17 }
  0x3c   :  { %p710_p13 = scmp.ne.s32.totalorder %s56_s17, %s709_s1  ;;  %p715_p1 = scmp.lt.s32.totalorder %s709_s1, %s709_s1 }
  0x3e   :  { %p716_p2 = por %p715_p1, %p714_p0 }
  0x40   :  { %p717_p3 = pnand %p716_p2, %p710_p13 }
  0x42   :  { %720 = shalt.err (!%p717_p3)
}
  0x43   :  { %61 = dma.hbm_to_vmem [thread:$0]  %s909_s3, 2048, %s56_s17, [#allocation9], %s752_s11, %s752_s11, %s753_s12  }
  0x44   :  { %743 = dma.done.wait [#allocation3], 128  }
  0x45   :  { %744 = vsyncadd [#allocation3], 4294967168 }
  0x46   :  { %745 = dma.done.wait [#allocation6], 4096  }
  0x47   :  { %746 = vsyncadd [#allocation6], 4294963200 }
  0x48   :  { %747 = dma.done.wait [#allocation9], 2048  }
  0x49   :  { %748 = vsyncadd [#allocation9], 4294965248  ;;  %v757_v0 = vmov 0.0|0.0   ;;  %vm758_vm0 = vmmov 0   ;;  %v759_v1 = vmov 0.0   ;;  %v81_v2 = vld [vmem:[#allocation5] sm:$0xff] }
  0x4a   :  { %547 = vmatprep.subr.bf16.mxu0 %v757_v0  ;;  %474 = vmatprep.mubr.msk.f32.mxu0 %vm758_vm0, %v759_v1  ;;  %v82_v3 = vld [vmem:[#allocation5 + $0x8] sm:$0xff]  ;;  %v83_v4 = vld [vmem:[#allocation5 + $0x10] sm:$0xff]  ;;  %v84_v6 = vld [vmem:[#allocation5 + $0x18] sm:$0xff]  ;;  %s760_s28 = smov [#allocation10]  }
  0x4b   :  { %571 = vmatprep.subr.bf16.mxu1 %v757_v0  ;;  %509 = vmatprep.mubr.msk.f32.mxu1 %vm758_vm0, %v759_v1  ;;  %v548_v5 = vpack.c.bf16 %v82_v3, %v81_v2  ;;  %v551_v7 = vpack.c.bf16 %v84_v6, %v83_v4  ;;  %v85_v8 = vld [vmem:[#allocation5 + $0x20] sm:$0xff]  ;;  %v86_v9 = vld [vmem:[#allocation5 + $0x28] sm:$0xff]  ;;  %v181_v12 = vld [vmem:[#allocation7 + $0x10] sm:$0xff]  ;;  %s377_s29 = sshll.u32 %s760_s28, 4  ;;  %s378_s29 = int_to_ptr.vmem [resolvable:$true] %s377_s29 }
  0x4c   :  { %v179_v10 = vld [vmem:[#allocation7] sm:$0xff]  ;;  %v180_v11 = vld [vmem:[#allocation7 + $0x8] sm:$0xff]  ;;  %v182_v13 = vld [vmem:[#allocation7 + $0x18] sm:$0xff]  ;;  %v554_v14 = vpack.c.bf16 %v86_v9, %v85_v8  ;;  %p726_p5 = scmp.lt.s32.totalorder %s378_s29, %s378_s29 }
  0x4d   :  { %549 = vmatpush3.bf16.msra.mxu0 %v548_v5  ;;  %v572_v15 = vpack.c.bf16 %v180_v11, %v179_v10  ;;  %v87_v16 = vld [vmem:[#allocation5 + $0x30] sm:$0xff]  ;;  %v88_v17 = vld [vmem:[#allocation5 + $0x38] sm:$0xff]  ;;  %v575_v18 = vpack.c.bf16 %v182_v13, %v181_v12  ;;  %v183_v19 = vld [vmem:[#allocation7 + $0x20] sm:$0xff] }
  0x4e   :  { %550 = vmatprep.subr.bf16.mxu0 %v757_v0  ;;  %v184_v20 = vld [vmem:[#allocation7 + $0x28] sm:$0xff]  ;;  %v557_v21 = vpack.c.bf16 %v88_v17, %v87_v16  ;;  %v89_v22 = vld [vmem:[#allocation5 + $0x40] sm:$0xff]  ;;  %v91_v26 = vld [vmem:[#allocation5 + $0x50] sm:$0xff] }
  0x4f   :  { %573 = vmatpush3.bf16.msra.mxu1 %v572_v15  ;;  %v90_v23 = vld [vmem:[#allocation5 + $0x48] sm:$0xff]  ;;  %v578_v24 = vpack.c.bf16 %v184_v20, %v183_v19  ;;  %v92_v27 = vld [vmem:[#allocation5 + $0x58] sm:$0xff]  ;;  %v93_v29 = vld [vmem:[#allocation5 + $0x60] sm:$0xff] }
  0x50   :  { %574 = vmatprep.subr.bf16.mxu1 %v757_v0  ;;  %v560_v25 = vpack.c.bf16 %v90_v23, %v89_v22  ;;  %v563_v28 = vpack.c.bf16 %v92_v27, %v91_v26  ;;  %v94_v30 = vld [vmem:[#allocation5 + $0x68] sm:$0xff]  ;;  %v95_v32 = vld [vmem:[#allocation5 + $0x70] sm:$0xff]  ;;  %v96_v33 = vld [vmem:[#allocation5 + $0x78] sm:$0xff] }
  0x51   :  { %552 = vmatpush3.bf16.msra.mxu0 %v551_v7  ;;  %v566_v31 = vpack.c.bf16 %v94_v30, %v93_v29  ;;  %v569_v34 = vpack.c.bf16 %v96_v33, %v95_v32  ;;  %v80_v35 = vld [vmem:[#allocation2] sm:$0xff]  ;;  %v185_v36 = vld [vmem:[#allocation7 + $0x30] sm:$0xff]  ;;  %v187_v39 = vld [vmem:[#allocation7 + $0x40] sm:$0xff] }
  0x52   :  { %553 = vmatprep.subr.bf16.mxu0 %v757_v0  ;;  %v186_v37 = vld [vmem:[#allocation7 + $0x38] sm:$0xff]  ;;  %v188_v40 = vld [vmem:[#allocation7 + $0x48] sm:$0xff]  ;;  %v189_v42 = vld [vmem:[#allocation7 + $0x50] sm:$0xff] }
  0x53   :  { %576 = vmatpush3.bf16.msra.mxu1 %v575_v18  ;;  %v581_v38 = vpack.c.bf16 %v186_v37, %v185_v36  ;;  %v584_v41 = vpack.c.bf16 %v188_v40, %v187_v39  ;;  %v190_v43 = vld [vmem:[#allocation7 + $0x58] sm:$0xff]  ;;  %v191_v45 = vld [vmem:[#allocation7 + $0x60] sm:$0xff]  ;;  %v192_v46 = vld [vmem:[#allocation7 + $0x68] sm:$0xff] }
  0x54   :  { %577 = vmatprep.subr.bf16.mxu1 %v757_v0  ;;  %v587_v44 = vpack.c.bf16 %v190_v43, %v189_v42  ;;  %v590_v47 = vpack.c.bf16 %v192_v46, %v191_v45  ;;  %v193_v48 = vld [vmem:[#allocation7 + $0x70] sm:$0xff]  ;;  %v194_v49 = vld [vmem:[#allocation7 + $0x78] sm:$0xff]  ;;  %v277_v51 = vld [vmem:[#allocation8] sm:$0xff] }
  0x55   :  { %555 = vmatpush3.bf16.msra.mxu0 %v554_v14  ;;  %v593_v50 = vpack.c.bf16 %v194_v49, %v193_v48  ;;  %v278_v52 = vld [vmem:[#allocation8 + $0x8] sm:$0xff]  ;;  %v279_v53 = vld [vmem:[#allocation8 + $0x10] sm:$0xff]  ;;  %v280_v55 = vld [vmem:[#allocation8 + $0x18] sm:$0xff] }
  0x56   :  { %556 = vmatprep.subr.bf16.mxu0 %v757_v0  ;;  %v596_v54 = vpack.c.bf16 %v278_v52, %v277_v51  ;;  %v599_v56 = vpack.c.bf16 %v280_v55, %v279_v53  ;;  %v281_v57 = vld [vmem:[#allocation8 + $0x20] sm:$0xff]  ;;  %v282_v58 = vld [vmem:[#allocation8 + $0x28] sm:$0xff]  ;;  %v388_v60 = vld [vmem:[%s910_s4] ss:$0 sm:$0xff] }
  0x57   :  { %579 = vmatpush3.bf16.msra.mxu1 %v578_v24  ;;  %v602_v59 = vpack.c.bf16 %v282_v58, %v281_v57  ;;  %v283_v6 = vld [vmem:[#allocation8 + $0x30] sm:$0xff]  ;;  %v284_v7 = vld [vmem:[#allocation8 + $0x38] sm:$0xff]  ;;  %v285_v9 = vld [vmem:[#allocation8 + $0x40] sm:$0xff] }
  0x58   :  { %580 = vmatprep.subr.bf16.mxu1 %v757_v0  ;;  %v605_v8 = vpack.c.bf16 %v284_v7, %v283_v6  ;;  %v286_v10 = vld [vmem:[#allocation8 + $0x48] sm:$0xff]  ;;  %v287_v12 = vld [vmem:[#allocation8 + $0x50] sm:$0xff]  ;;  %v288_v13 = vld [vmem:[#allocation8 + $0x58] sm:$0xff] }
  0x59   :  { %558 = vmatpush3.bf16.msra.mxu0 %v557_v21  ;;  %v608_v11 = vpack.c.bf16 %v286_v10, %v285_v9  ;;  %v611_v14 = vpack.c.bf16 %v288_v13, %v287_v12  ;;  %v289_v15 = vld [vmem:[#allocation8 + $0x60] sm:$0xff]  ;;  %v290_v16 = vld [vmem:[#allocation8 + $0x68] sm:$0xff]  ;;  %v291_v18 = vld [vmem:[#allocation8 + $0x70] sm:$0xff] }
  0x5a   :  { %559 = vmatprep.subr.bf16.mxu0 %v757_v0  ;;  %v614_v17 = vpack.c.bf16 %v290_v16, %v289_v15  ;;  %v292_v19 = vld [vmem:[#allocation8 + $0x78] sm:$0xff] }
  0x5b   :  { %582 = vmatpush3.bf16.msra.mxu1 %v581_v38  ;;  %v617_v20 = vpack.c.bf16 %v292_v19, %v291_v18  ;;  %v389_v21 = vld [vmem:[%s911_s5] ss:$0 sm:$0xff]  ;;  %s721_s5 = scalar_lea.vmem %s378_s29, 128 }
  0x5c   :  { %583 = vmatprep.subr.bf16.mxu1 %v757_v0  ;;  %p722_p4 = scmp.ne.s32.totalorder %s378_s29, %s721_s5  ;;  %p727_p6 = scmp.lt.s32.totalorder %s721_s5, %s721_s5 }
  0x5d   :  { %561 = vmatpush3.bf16.msra.mxu0 %v560_v25 }
  0x5e   :  { %562 = vmatprep.subr.bf16.mxu0 %v757_v0  ;;  %p728_p7 = por %p727_p6, %p726_p5 }
  0x5f   :  { %585 = vmatpush3.bf16.msra.mxu1 %v584_v41 }
  0x60   :  { %586 = vmatprep.subr.bf16.mxu1 %v757_v0  ;;  %p729_p8 = pnand %p728_p7, %p722_p4 }
  0x61   :  { %564 = vmatpush3.bf16.msra.mxu0 %v563_v28 }
  0x62   :  { %565 = vmatprep.subr.bf16.mxu0 %v757_v0 }
  0x63   :  { %588 = vmatpush3.bf16.msra.mxu1 %v587_v44 }
  0x64   :  { %589 = vmatprep.subr.bf16.mxu1 %v757_v0 }
  0x65   :  { %567 = vmatpush3.bf16.msra.mxu0 %v566_v31 }
  0x66   :  { %568 = vmatprep.subr.bf16.mxu0 %v757_v0 }
  0x67   :  { %591 = vmatpush3.bf16.msra.mxu1 %v590_v47 }
  0x68   :  { %592 = vmatprep.subr.bf16.mxu1 %v757_v0 }
  0x69   :  { %570 = vmatpush3.bf16.msra.mxu0 %v569_v34 }
  0x6a   :  { %595 = vmatprep.subr.bf16.mxu0 %v757_v0 }
  0x6b   :  { %594 = vmatpush3.bf16.msra.mxu1 %v593_v50 }
  0x6c   :  { %475 = vmatmul.mubr.f32.vlgmr.msra.gmra.mrb[0].mxu0 %v80_v35 }
  0x6d   :  { %544 = vmatprep.mubr.msk.f32.mxu0 %vm758_vm0, %v759_v1  ;;  %597 = vmatpush3.bf16.msra.mxu0 %v596_v54 }
  0x6e   :  { %598 = vmatprep.subr.bf16.mxu0 %v757_v0 }
  0x71   :  { %600 = vmatpush3.bf16.msra.mxu0 %v599_v56 }
  0x72   :  { %601 = vmatprep.subr.bf16.mxu0 %v757_v0 }
  0x75   :  { %603 = vmatpush3.bf16.msra.mxu0 %v602_v59 }
  0x76   :  { %604 = vmatprep.subr.bf16.mxu0 %v757_v0 }
  0x79   :  { %606 = vmatpush3.bf16.msra.mxu0 %v605_v8 }
  0x7a   :  { %607 = vmatprep.subr.bf16.mxu0 %v757_v0 }
  0x7d   :  { %609 = vmatpush3.bf16.msra.mxu0 %v608_v11 }
  0x7e   :  { %610 = vmatprep.subr.bf16.mxu0 %v757_v0 }
  0x81   :  { %612 = vmatpush3.bf16.msra.mxu0 %v611_v14 }
  0x82   :  { %613 = vmatprep.subr.bf16.mxu0 %v757_v0 }
  0x85   :  { %615 = vmatpush3.bf16.msra.mxu0 %v614_v17 }
  0x86   :  { %616 = vmatprep.subr.bf16.mxu0 %v757_v0  ;;  %v390_v0 = vld [vmem:[%s912_s6] ss:$0 sm:$0xff] }
  0x89   :  { %618 = vmatpush3.bf16.msra.mxu0 %v617_v20 }
 0x13f   :  { %v170_v61 = vpop.f32.mrb[0].mxu0 }
 0x140   :  { %v171_v62 = vadd.f32 %v388_v60, %v170_v61  ;;  %v476_v63 = vpop.f32.mrb[1].mxu0 }
 0x142   :  { %v175_v1 = vmul.f32 0.70710677, %v171_v62  ;;  %v174_v3 = vmul.f32 0.5, %v171_v62 }
 0x144   :  { %629 = verf.f32 %v175_v1 }
 0x14e   :  { %v630_v2 = vpop.eup %629 }
 0x14f   :  { %v177_v4 = vadd.f32 1.0, %v630_v2 }
 0x151   :  { %v178_v5 = vmul.f32 %v177_v4, %v174_v3 }
 0x153   :  { %510 = vmatmul.mubr.f32.vlgmr.msra.gmra.mrb[0].mxu1 %v178_v5 }
 0x226   :  { %v268_v22 = vpop.f32.mrb[0].mxu1 }
 0x227   :  { %v269_v23 = vadd.f32 %v389_v21, %v268_v22  ;;  %v511_v24 = vpop.f32.mrb[1].mxu1 }
 0x229   :  { %v273_v25 = vmul.f32 0.70710677, %v269_v23  ;;  %v272_v27 = vmul.f32 0.5, %v269_v23 }
 0x22b   :  { %631 = verf.f32 %v273_v25 }
 0x235   :  { %v632_v26 = vpop.eup %631 }
 0x236   :  { %v275_v28 = vadd.f32 1.0, %v632_v26 }
 0x238   :  { %v276_v29 = vmul.f32 %v275_v28, %v272_v27 }
 0x23a   :  { %545 = vmatmul.mubr.f32.vlgmr.msra.gmra.mrb[2].mxu0 %v276_v29 }
 0x30d   :  { %v366_v30 = vpop.f32.mrb[2].mxu0 }
 0x30e   :  { %v367_v31 = vadd.f32 %v390_v0, %v366_v30  ;;  %v546_v32 = vpop.f32.mrb[3].mxu0 }
 0x310   :  { %370 = vst [vmem:[#allocation10] sm:$0xff] %v367_v31 }
 0x311   :  { %732 = shalt.err (!%p729_p8)
}
 0x312   :  { %s733_s9 = scalar_lea.hbm %s913_s7, 128 }
 0x313   :  { %p734_p9 = scmp.ne.s32.totalorder %s913_s7, %s733_s9  ;;  %p737_p10 = scmp.lt.u32.totalorder %s733_s9, %s913_s7 }
 0x315   :  { %p739_p11 = pnand %p737_p10, %p734_p9 }
 0x317   :  { %742 = shalt.err (!%p739_p11)
}
 0x318   :  { %380 = dma.vmem_to_hbm [thread:$0]  %s378_s29, 128, %s913_s7, [#allocation4]  }
 0x319   :  { %749 = dma.done.wait [#allocation4], 128  }
 0x31a   :  { %750 = vsyncadd [#allocation4], 4294967168 }
 0x31b   :  { %384 = vsyncpa [#allocation3], 1 }
 0x31c   :  { %385 = vsyncpa [#allocation6], 1 }
 0x31d   :  { %386 = vsyncpa [#allocation9], 1 }
 0x31e   :  { %387 = vsyncpa [#allocation4], 1 }

</bundles_post_ra>
